<compile_context>
chip_gen: v7x
topology: tpu7x:2x2x1
jax: 0.10.0
libtpu: 0.0.40
codegen_flags: <defaults>
</compile_context>

<pallas_src>
import math
import functools

import jax
import jax.numpy as jnp
from jax import lax
from jax.experimental import pallas as pl
from jax.experimental.pallas import tpu as pltpu


def _round_up(x, m):
    return ((x + m - 1) // m) * m


def _gat_attention_kernel(qs_ref, ks_ref, vs_ref,
                          wq_ref, bq_ref, wk_ref, bk_ref, wv_ref, bv_ref,
                          out_ref, s_scratch,
                          *, num_heads, dk, out_channels, compute_dtype):
    # --- Linear projections (MXU, f32 accumulation, f32 bias add). ---
    q = jnp.dot(qs_ref[...], wq_ref[...], preferred_element_type=jnp.float32) + bq_ref[...]
    k = jnp.dot(ks_ref[...], wk_ref[...], preferred_element_type=jnp.float32) + bk_ref[...]
    v = jnp.dot(vs_ref[...], wv_ref[...], preferred_element_type=jnp.float32) + bv_ref[...]

    # Fold the 1/sqrt(dk) scale into q once (instead of H times on (TN, L)).
    scale = 1.0 / math.sqrt(float(dk))
    q = (q * scale).astype(compute_dtype)
    k = k.astype(compute_dtype)
    v = v.astype(compute_dtype)

    contract_qk = (((1,), (1,)), ((), ()))   # (TN, dk) x (L, dk) -> (TN, L), no kh.T
    contract_av = (((1,), (0,)), ((), ()))   # (TN, L)  x (L, D)  -> (TN, D)

    # Pass 1: per-head scores -> scratch, plus running max over the head axis.
    m = None
    for h in range(num_heads):
        qh = q[:, h * dk:(h + 1) * dk]
        kh = k[:, h * dk:(h + 1) * dk]
        s_h = lax.dot_general(qh, kh, contract_qk,
                              preferred_element_type=jnp.float32)
        s_scratch[h] = s_h
        m = s_h if m is None else jnp.maximum(m, s_h)

    # Pass 2: exponentials (overwrite scratch) + denominator over the head axis.
    den = None
    for h in range(num_heads):
        e_h = jnp.exp(s_scratch[h] - m)
        s_scratch[h] = e_h
        den = e_h if den is None else den + e_h
    inv_den = pl.reciprocal(den, approx=True)   # den >= 1 after max subtraction

    # Pass 3: output[n, h, d] = sum_l attn[n, l, h] * v[l, h, d]; each head's
    # (TN, L) x (L, D_out) matmul is written straight into its lane slice.
    for h in range(num_heads):
        attn_h = (s_scratch[h] * inv_den).astype(compute_dtype)
        vh = v[:, h * out_channels:(h + 1) * out_channels]
        out_ref[:, h * out_channels:(h + 1) * out_channels] = lax.dot_general(
            attn_h, vh, contract_av,
            preferred_element_type=jnp.float32).astype(out_ref.dtype)


def gat_attention(qs, ks, vs, params, *, num_heads, out_channels,
                  tile_n=256, compute_dtype=jnp.bfloat16):
    N, in_channels = qs.shape
    L = ks.shape[0]
    dk = in_channels // num_heads
    out_width = num_heads * out_channels

    # Query-axis tiling: pad N so every tile is full and sublane-aligned.
    tile_n = _round_up(min(tile_n, _round_up(N, 8)), 8)
    n_pad = _round_up(N, tile_n)
    qs_p = qs if n_pad == N else jnp.pad(qs, ((0, n_pad - N), (0, 0)))
    grid = (n_pad // tile_n,)

    # bf16 MXU operands; biases stay f32 (added after the f32 accumulation).
    qs_c = qs_p.astype(compute_dtype)
    ks_c = ks.astype(compute_dtype)
    vs_c = vs.astype(compute_dtype)
    wq = params["wq"].astype(compute_dtype)
    wk = params["wk"].astype(compute_dtype)
    wv = params["wv"].astype(compute_dtype)
    bq, bk, bv = params["bq"], params["bk"], params["bv"]

    kernel = functools.partial(
        _gat_attention_kernel,
        num_heads=num_heads, dk=dk, out_channels=out_channels,
        compute_dtype=compute_dtype)

    # K/V/weights: constant index_map -> stay VMEM-resident across the grid.
    resident = lambda shape: pl.BlockSpec(shape, lambda i: (0,) * len(shape))

    out_flat = pl.pallas_call(
        kernel,
        out_shape=jax.ShapeDtypeStruct((n_pad, out_width), jnp.float32),
        grid=grid,
        in_specs=[
            pl.BlockSpec((tile_n, in_channels), lambda i: (i, 0)),   # qs (tiled)
            resident(ks_c.shape), resident(vs_c.shape),              # K/V
            resident(wq.shape), resident(bq.shape),
            resident(wk.shape), resident(bk.shape),
            resident(wv.shape), resident(bv.shape),
        ],
        out_specs=pl.BlockSpec((tile_n, out_width), lambda i: (i, 0)),
        scratch_shapes=[pltpu.VMEM((num_heads, tile_n, L), jnp.float32)],
        compiler_params=pltpu.CompilerParams(
            dimension_semantics=("parallel",),
            vmem_limit_bytes=64 * 1024 * 1024),
    )(qs_c, ks_c, vs_c, wq, bq, wk, bk, wv, bv)

    return out_flat[:N].reshape(N, num_heads, out_channels)


def init_params(key, in_channels, out_channels, num_heads, dtype=jnp.float32):
    """Deterministic Linear init (PyTorch-style uniform bounds), weights stored (in, out)."""
    dk = in_channels // num_heads
    dims = {
        "wq": (in_channels, num_heads * dk),
        "wk": (in_channels, num_heads * dk),
        "wv": (in_channels, num_heads * out_channels),
    }
    params = {}
    bound = 1.0 / math.sqrt(in_channels)
    keys = jax.random.split(key, 6)
    for i, (name, shape) in enumerate(dims.items()):
        params[name] = jax.random.uniform(keys[2 * i], shape, dtype, -bound, bound)
        params["b" + name[1:]] = jax.random.uniform(
            keys[2 * i + 1], (1, shape[1]), dtype, -bound, bound)
    return params


def _reference(qs, ks, vs, params, num_heads, out_channels):
    """Plain-JAX f32 reference mirroring the PyTorch forward."""
    N, C = qs.shape
    dk = C // num_heads
    q = (qs @ params["wq"] + params["bq"]).reshape(-1, num_heads, dk)
    k = (ks @ params["wk"] + params["bk"]).reshape(-1, num_heads, dk)
    v = (vs @ params["wv"] + params["bv"]).reshape(-1, num_heads, out_channels)
    scores = jnp.einsum("nhm,lhm->nlh", q, k) / jnp.sqrt(jnp.float32(dk))
    weights = jax.nn.softmax(scores, axis=-1)
    return jnp.einsum("nlh,lhd->nhd", weights, v)


if __name__ == "__main__":
    in_channels = 32
    out_channels = 16
    num_heads = 4
    N = 8   # number of query nodes
    L = 8   # number of key/value nodes

    key = jax.random.PRNGKey(0)
    kq, kk, kv, kp = jax.random.split(key, 4)
    qs = jax.random.normal(kq, (N, in_channels), jnp.float32)
    ks = jax.random.normal(kk, (L, in_channels), jnp.float32)
    vs = jax.random.normal(kv, (L, in_channels), jnp.float32)

    params = init_params(kp, in_channels, out_channels, num_heads)

    out = gat_attention(qs, ks, vs, params,
                        num_heads=num_heads, out_channels=out_channels)
    out = jax.block_until_ready(out)

    ref = _reference(qs, ks, vs, params, num_heads, out_channels)
    assert out.shape == (N, num_heads, out_channels)
    # bf16 MXU operands + approx reciprocal -> loosened tolerance vs. f32 ref.
    assert jnp.allclose(out, ref, atol=3e-2, rtol=3e-2), \
        f"max abs err {jnp.max(jnp.abs(out - ref))}"

    print("KERNEL_OK")
</pallas_src>

<mosaic_0001>
module attributes {stable_mosaic.version = 11 : i64} {
  func.func @_gat_attention_kernel(%arg0: i32, %arg1: memref<8x32xbf16, #tpu.memory_space<vmem>>, %arg2: memref<8x32xbf16, #tpu.memory_space<vmem>>, %arg3: memref<8x32xbf16, #tpu.memory_space<vmem>>, %arg4: memref<32x32xbf16, #tpu.memory_space<vmem>>, %arg5: memref<1x32xf32, #tpu.memory_space<vmem>>, %arg6: memref<32x32xbf16, #tpu.memory_space<vmem>>, %arg7: memref<1x32xf32, #tpu.memory_space<vmem>>, %arg8: memref<32x64xbf16, #tpu.memory_space<vmem>>, %arg9: memref<1x64xf32, #tpu.memory_space<vmem>>, %arg10: memref<8x64xf32, #tpu.memory_space<vmem>>, %arg11: memref<4x8x8xf32, #tpu.memory_space<vmem>>) attributes {dimension_semantics = [#tpu.dimension_semantics<parallel>], iteration_bounds = array<i64: 1>, scalar_prefetch = 0 : i64, scratch_operands = 1 : i64, tpu.core_type = #tpu.core_type<tc>, window_params = [{transform_indices = @transform_0, window_bounds = array<i64: 8, 32>}, {pipeline_mode = #tpu.pipeline_mode<synchronous>, transform_indices = @transform_1, window_bounds = array<i64: 8, 32>}, {pipeline_mode = #tpu.pipeline_mode<synchronous>, transform_indices = @transform_2, window_bounds = array<i64: 8, 32>}, {pipeline_mode = #tpu.pipeline_mode<synchronous>, transform_indices = @transform_3, window_bounds = array<i64: 32, 32>}, {pipeline_mode = #tpu.pipeline_mode<synchronous>, transform_indices = @transform_4, window_bounds = array<i64: 1, 32>}, {pipeline_mode = #tpu.pipeline_mode<synchronous>, transform_indices = @transform_5, window_bounds = array<i64: 32, 32>}, {pipeline_mode = #tpu.pipeline_mode<synchronous>, transform_indices = @transform_6, window_bounds = array<i64: 1, 32>}, {pipeline_mode = #tpu.pipeline_mode<synchronous>, transform_indices = @transform_7, window_bounds = array<i64: 32, 64>}, {pipeline_mode = #tpu.pipeline_mode<synchronous>, transform_indices = @transform_8, window_bounds = array<i64: 1, 64>}, {transform_indices = @transform_9, window_bounds = array<i64: 8, 64>}]} {
    %c0 = arith.constant 0 : index
    %c0_0 = arith.constant 0 : index
    %0 = vector.load %arg1[%c0, %c0_0] : memref<8x32xbf16, #tpu.memory_space<vmem>>, vector<8x32xbf16>
    %c0_1 = arith.constant 0 : index
    %c0_2 = arith.constant 0 : index
    %1 = vector.load %arg4[%c0_1, %c0_2] : memref<32x32xbf16, #tpu.memory_space<vmem>>, vector<32x32xbf16>
    %cst = arith.constant dense<0.000000e+00> : vector<8x32xf32>
    %2 = tpu.matmul %0, %1, %cst {dimension_numbers = #tpu.dot_dimension_numbers<[1], [0], [0], [1], [0, 0, 1, 1], [], []>} : vector<8x32xbf16>, vector<32x32xbf16>, vector<8x32xf32> -> vector<8x32xf32>
    %c0_3 = arith.constant 0 : index
    %c0_4 = arith.constant 0 : index
    %3 = vector.load %arg5[%c0_3, %c0_4] : memref<1x32xf32, #tpu.memory_space<vmem>>, vector<1x32xf32>
    %4 = vector.broadcast %3 : vector<1x32xf32> to vector<8x32xf32>
    %5 = arith.addf %2, %4 : vector<8x32xf32>
    %c0_5 = arith.constant 0 : index
    %c0_6 = arith.constant 0 : index
    %6 = vector.load %arg2[%c0_5, %c0_6] : memref<8x32xbf16, #tpu.memory_space<vmem>>, vector<8x32xbf16>
    %c0_7 = arith.constant 0 : index
    %c0_8 = arith.constant 0 : index
    %7 = vector.load %arg6[%c0_7, %c0_8] : memref<32x32xbf16, #tpu.memory_space<vmem>>, vector<32x32xbf16>
    %cst_9 = arith.constant dense<0.000000e+00> : vector<8x32xf32>
    %8 = tpu.matmul %6, %7, %cst_9 {dimension_numbers = #tpu.dot_dimension_numbers<[1], [0], [0], [1], [0, 0, 1, 1], [], []>} : vector<8x32xbf16>, vector<32x32xbf16>, vector<8x32xf32> -> vector<8x32xf32>
    %c0_10 = arith.constant 0 : index
    %c0_11 = arith.constant 0 : index
    %9 = vector.load %arg7[%c0_10, %c0_11] : memref<1x32xf32, #tpu.memory_space<vmem>>, vector<1x32xf32>
    %10 = vector.broadcast %9 : vector<1x32xf32> to vector<8x32xf32>
    %11 = arith.addf %8, %10 : vector<8x32xf32>
    %c0_12 = arith.constant 0 : index
    %c0_13 = arith.constant 0 : index
    %12 = vector.load %arg3[%c0_12, %c0_13] : memref<8x32xbf16, #tpu.memory_space<vmem>>, vector<8x32xbf16>
    %c0_14 = arith.constant 0 : index
    %c0_15 = arith.constant 0 : index
    %13 = vector.load %arg8[%c0_14, %c0_15] : memref<32x64xbf16, #tpu.memory_space<vmem>>, vector<32x64xbf16>
    %cst_16 = arith.constant dense<0.000000e+00> : vector<8x64xf32>
    %14 = tpu.matmul %12, %13, %cst_16 {dimension_numbers = #tpu.dot_dimension_numbers<[1], [0], [0], [1], [0, 0, 1, 1], [], []>} : vector<8x32xbf16>, vector<32x64xbf16>, vector<8x64xf32> -> vector<8x64xf32>
    %c0_17 = arith.constant 0 : index
    %c0_18 = arith.constant 0 : index
    %15 = vector.load %arg9[%c0_17, %c0_18] : memref<1x64xf32, #tpu.memory_space<vmem>>, vector<1x64xf32>
    %16 = vector.broadcast %15 : vector<1x64xf32> to vector<8x64xf32>
    %17 = arith.addf %14, %16 : vector<8x64xf32>
    %cst_19 = arith.constant 0.353553385 : f32
    %18 = vector.broadcast %cst_19 : f32 to vector<8x32xf32>
    %19 = arith.mulf %5, %18 : vector<8x32xf32>
    %20 = arith.truncf %19 : vector<8x32xf32> to vector<8x32xbf16>
    %21 = arith.truncf %11 : vector<8x32xf32> to vector<8x32xbf16>
    %22 = arith.truncf %17 : vector<8x64xf32> to vector<8x64xbf16>
    %23 = vector.extract_strided_slice %20 {offsets = [0, 0], sizes = [8, 8], strides = [1, 1]} : vector<8x32xbf16> to vector<8x8xbf16>
    %24 = vector.extract_strided_slice %21 {offsets = [0, 0], sizes = [8, 8], strides = [1, 1]} : vector<8x32xbf16> to vector<8x8xbf16>
    %cst_20 = arith.constant dense<0.000000e+00> : vector<8x8xf32>
    %25 = tpu.matmul %23, %24, %cst_20 {dimension_numbers = #tpu.dot_dimension_numbers<[1], [1], [0], [0], [0, 0, 1, 0], [], []>} : vector<8x8xbf16>, vector<8x8xbf16>, vector<8x8xf32> -> vector<8x8xf32>
    %c0_21 = arith.constant 0 : index
    %c0_22 = arith.constant 0 : index
    %c0_23 = arith.constant 0 : index
    %26 = vector.load %arg11[%c0_21, %c0_22, %c0_23] : memref<4x8x8xf32, #tpu.memory_space<vmem>>, vector<1x8x8xf32>
    %27 = vector.shape_cast %26 : vector<1x8x8xf32> to vector<8x8xf32>
    %28 = vector.shape_cast %25 : vector<8x8xf32> to vector<1x8x8xf32>
    tpu.vector_store %arg11[%c0_21, %c0_22, %c0_23], %28 {strides = array<i32>} : memref<4x8x8xf32, #tpu.memory_space<vmem>>, vector<1x8x8xf32>,
    %29 = vector.extract_strided_slice %20 {offsets = [0, 8], sizes = [8, 8], strides = [1, 1]} : vector<8x32xbf16> to vector<8x8xbf16>
    %30 = vector.extract_strided_slice %21 {offsets = [0, 8], sizes = [8, 8], strides = [1, 1]} : vector<8x32xbf16> to vector<8x8xbf16>
    %cst_24 = arith.constant dense<0.000000e+00> : vector<8x8xf32>
    %31 = tpu.matmul %29, %30, %cst_24 {dimension_numbers = #tpu.dot_dimension_numbers<[1], [1], [0], [0], [0, 0, 1, 0], [], []>} : vector<8x8xbf16>, vector<8x8xbf16>, vector<8x8xf32> -> vector<8x8xf32>
    %c1 = arith.constant 1 : index
    %c0_25 = arith.constant 0 : index
    %c0_26 = arith.constant 0 : index
    %32 = vector.load %arg11[%c1, %c0_25, %c0_26] : memref<4x8x8xf32, #tpu.memory_space<vmem>>, vector<1x8x8xf32>
    %33 = vector.shape_cast %32 : vector<1x8x8xf32> to vector<8x8xf32>
    %34 = vector.shape_cast %31 : vector<8x8xf32> to vector<1x8x8xf32>
    tpu.vector_store %arg11[%c1, %c0_25, %c0_26], %34 {strides = array<i32>} : memref<4x8x8xf32, #tpu.memory_space<vmem>>, vector<1x8x8xf32>,
    %35 = arith.maximumf %25, %31 : vector<8x8xf32>
    %36 = vector.extract_strided_slice %20 {offsets = [0, 16], sizes = [8, 8], strides = [1, 1]} : vector<8x32xbf16> to vector<8x8xbf16>
    %37 = vector.extract_strided_slice %21 {offsets = [0, 16], sizes = [8, 8], strides = [1, 1]} : vector<8x32xbf16> to vector<8x8xbf16>
    %cst_27 = arith.constant dense<0.000000e+00> : vector<8x8xf32>
    %38 = tpu.matmul %36, %37, %cst_27 {dimension_numbers = #tpu.dot_dimension_numbers<[1], [1], [0], [0], [0, 0, 1, 0], [], []>} : vector<8x8xbf16>, vector<8x8xbf16>, vector<8x8xf32> -> vector<8x8xf32>
    %c2 = arith.constant 2 : index
    %c0_28 = arith.constant 0 : index
    %c0_29 = arith.constant 0 : index
    %39 = vector.load %arg11[%c2, %c0_28, %c0_29] : memref<4x8x8xf32, #tpu.memory_space<vmem>>, vector<1x8x8xf32>
    %40 = vector.shape_cast %39 : vector<1x8x8xf32> to vector<8x8xf32>
    %41 = vector.shape_cast %38 : vector<8x8xf32> to vector<1x8x8xf32>
    tpu.vector_store %arg11[%c2, %c0_28, %c0_29], %41 {strides = array<i32>} : memref<4x8x8xf32, #tpu.memory_space<vmem>>, vector<1x8x8xf32>,
    %42 = arith.maximumf %35, %38 : vector<8x8xf32>
    %43 = vector.extract_strided_slice %20 {offsets = [0, 24], sizes = [8, 8], strides = [1, 1]} : vector<8x32xbf16> to vector<8x8xbf16>
    %44 = vector.extract_strided_slice %21 {offsets = [0, 24], sizes = [8, 8], strides = [1, 1]} : vector<8x32xbf16> to vector<8x8xbf16>
    %cst_30 = arith.constant dense<0.000000e+00> : vector<8x8xf32>
    %45 = tpu.matmul %43, %44, %cst_30 {dimension_numbers = #tpu.dot_dimension_numbers<[1], [1], [0], [0], [0, 0, 1, 0], [], []>} : vector<8x8xbf16>, vector<8x8xbf16>, vector<8x8xf32> -> vector<8x8xf32>
    %c3 = arith.constant 3 : index
    %c0_31 = arith.constant 0 : index
    %c0_32 = arith.constant 0 : index
    %46 = vector.load %arg11[%c3, %c0_31, %c0_32] : memref<4x8x8xf32, #tpu.memory_space<vmem>>, vector<1x8x8xf32>
    %47 = vector.shape_cast %46 : vector<1x8x8xf32> to vector<8x8xf32>
    %48 = vector.shape_cast %45 : vector<8x8xf32> to vector<1x8x8xf32>
    tpu.vector_store %arg11[%c3, %c0_31, %c0_32], %48 {strides = array<i32>} : memref<4x8x8xf32, #tpu.memory_space<vmem>>, vector<1x8x8xf32>,
    %49 = arith.maximumf %42, %45 : vector<8x8xf32>
    %c0_33 = arith.constant 0 : index
    %c0_34 = arith.constant 0 : index
    %c0_35 = arith.constant 0 : index
    %50 = vector.load %arg11[%c0_33, %c0_34, %c0_35] : memref<4x8x8xf32, #tpu.memory_space<vmem>>, vector<1x8x8xf32>
    %51 = vector.shape_cast %50 : vector<1x8x8xf32> to vector<8x8xf32>
    %52 = arith.subf %51, %49 : vector<8x8xf32>
    %53 = math.exp %52 : vector<8x8xf32>
    %c0_36 = arith.constant 0 : index
    %c0_37 = arith.constant 0 : index
    %c0_38 = arith.constant 0 : index
    %54 = vector.load %arg11[%c0_36, %c0_37, %c0_38] : memref<4x8x8xf32, #tpu.memory_space<vmem>>, vector<1x8x8xf32>
    %55 = vector.shape_cast %54 : vector<1x8x8xf32> to vector<8x8xf32>
    %56 = vector.shape_cast %53 : vector<8x8xf32> to vector<1x8x8xf32>
    tpu.vector_store %arg11[%c0_36, %c0_37, %c0_38], %56 {strides = array<i32>} : memref<4x8x8xf32, #tpu.memory_space<vmem>>, vector<1x8x8xf32>,
    %c1_39 = arith.constant 1 : index
    %c0_40 = arith.constant 0 : index
    %c0_41 = arith.constant 0 : index
    %57 = vector.load %arg11[%c1_39, %c0_40, %c0_41] : memref<4x8x8xf32, #tpu.memory_space<vmem>>, vector<1x8x8xf32>
    %58 = vector.shape_cast %57 : vector<1x8x8xf32> to vector<8x8xf32>
    %59 = arith.subf %58, %49 : vector<8x8xf32>
    %60 = math.exp %59 : vector<8x8xf32>
    %c1_42 = arith.constant 1 : index
    %c0_43 = arith.constant 0 : index
    %c0_44 = arith.constant 0 : index
    %61 = vector.load %arg11[%c1_42, %c0_43, %c0_44] : memref<4x8x8xf32, #tpu.memory_space<vmem>>, vector<1x8x8xf32>
    %62 = vector.shape_cast %61 : vector<1x8x8xf32> to vector<8x8xf32>
    %63 = vector.shape_cast %60 : vector<8x8xf32> to vector<1x8x8xf32>
    tpu.vector_store %arg11[%c1_42, %c0_43, %c0_44], %63 {strides = array<i32>} : memref<4x8x8xf32, #tpu.memory_space<vmem>>, vector<1x8x8xf32>,
    %64 = arith.addf %53, %60 : vector<8x8xf32>
    %c2_45 = arith.constant 2 : index
    %c0_46 = arith.constant 0 : index
    %c0_47 = arith.constant 0 : index
    %65 = vector.load %arg11[%c2_45, %c0_46, %c0_47] : memref<4x8x8xf32, #tpu.memory_space<vmem>>, vector<1x8x8xf32>
    %66 = vector.shape_cast %65 : vector<1x8x8xf32> to vector<8x8xf32>
    %67 = arith.subf %66, %49 : vector<8x8xf32>
    %68 = math.exp %67 : vector<8x8xf32>
    %c2_48 = arith.constant 2 : index
    %c0_49 = arith.constant 0 : index
    %c0_50 = arith.constant 0 : index
    %69 = vector.load %arg11[%c2_48, %c0_49, %c0_50] : memref<4x8x8xf32, #tpu.memory_space<vmem>>, vector<1x8x8xf32>
    %70 = vector.shape_cast %69 : vector<1x8x8xf32> to vector<8x8xf32>
    %71 = vector.shape_cast %68 : vector<8x8xf32> to vector<1x8x8xf32>
    tpu.vector_store %arg11[%c2_48, %c0_49, %c0_50], %71 {strides = array<i32>} : memref<4x8x8xf32, #tpu.memory_space<vmem>>, vector<1x8x8xf32>,
    %72 = arith.addf %64, %68 : vector<8x8xf32>
    %c3_51 = arith.constant 3 : index
    %c0_52 = arith.constant 0 : index
    %c0_53 = arith.constant 0 : index
    %73 = vector.load %arg11[%c3_51, %c0_52, %c0_53] : memref<4x8x8xf32, #tpu.memory_space<vmem>>, vector<1x8x8xf32>
    %74 = vector.shape_cast %73 : vector<1x8x8xf32> to vector<8x8xf32>
    %75 = arith.subf %74, %49 : vector<8x8xf32>
    %76 = math.exp %75 : vector<8x8xf32>
    %c3_54 = arith.constant 3 : index
    %c0_55 = arith.constant 0 : index
    %c0_56 = arith.constant 0 : index
    %77 = vector.load %arg11[%c3_54, %c0_55, %c0_56] : memref<4x8x8xf32, #tpu.memory_space<vmem>>, vector<1x8x8xf32>
    %78 = vector.shape_cast %77 : vector<1x8x8xf32> to vector<8x8xf32>
    %79 = vector.shape_cast %76 : vector<8x8xf32> to vector<1x8x8xf32>
    tpu.vector_store %arg11[%c3_54, %c0_55, %c0_56], %79 {strides = array<i32>} : memref<4x8x8xf32, #tpu.memory_space<vmem>>, vector<1x8x8xf32>,
    %80 = arith.addf %72, %76 : vector<8x8xf32>
    %81 = tpu.reciprocal %80 {approx = true} : vector<8x8xf32> -> vector<8x8xf32>
    %c0_57 = arith.constant 0 : index
    %c0_58 = arith.constant 0 : index
    %c0_59 = arith.constant 0 : index
    %82 = vector.load %arg11[%c0_57, %c0_58, %c0_59] : memref<4x8x8xf32, #tpu.memory_space<vmem>>, vector<1x8x8xf32>
    %83 = vector.shape_cast %82 : vector<1x8x8xf32> to vector<8x8xf32>
    %84 = arith.mulf %83, %81 : vector<8x8xf32>
    %85 = arith.truncf %84 : vector<8x8xf32> to vector<8x8xbf16>
    %86 = vector.extract_strided_slice %22 {offsets = [0, 0], sizes = [8, 16], strides = [1, 1]} : vector<8x64xbf16> to vector<8x16xbf16>
    %cst_60 = arith.constant dense<0.000000e+00> : vector<8x16xf32>
    %87 = tpu.matmul %85, %86, %cst_60 {dimension_numbers = #tpu.dot_dimension_numbers<[1], [0], [0], [1], [0, 0, 1, 1], [], []>} : vector<8x8xbf16>, vector<8x16xbf16>, vector<8x16xf32> -> vector<8x16xf32>
    %c0_61 = arith.constant 0 : index
    %c0_62 = arith.constant 0 : index
    %88 = vector.load %arg10[%c0_61, %c0_62] : memref<8x64xf32, #tpu.memory_space<vmem>>, vector<8x16xf32>
    tpu.vector_store %arg10[%c0_61, %c0_62], %87 {strides = array<i32>} : memref<8x64xf32, #tpu.memory_space<vmem>>, vector<8x16xf32>,
    %c1_63 = arith.constant 1 : index
    %c0_64 = arith.constant 0 : index
    %c0_65 = arith.constant 0 : index
    %89 = vector.load %arg11[%c1_63, %c0_64, %c0_65] : memref<4x8x8xf32, #tpu.memory_space<vmem>>, vector<1x8x8xf32>
    %90 = vector.shape_cast %89 : vector<1x8x8xf32> to vector<8x8xf32>
    %91 = arith.mulf %90, %81 : vector<8x8xf32>
    %92 = arith.truncf %91 : vector<8x8xf32> to vector<8x8xbf16>
    %93 = vector.extract_strided_slice %22 {offsets = [0, 16], sizes = [8, 16], strides = [1, 1]} : vector<8x64xbf16> to vector<8x16xbf16>
    %cst_66 = arith.constant dense<0.000000e+00> : vector<8x16xf32>
    %94 = tpu.matmul %92, %93, %cst_66 {dimension_numbers = #tpu.dot_dimension_numbers<[1], [0], [0], [1], [0, 0, 1, 1], [], []>} : vector<8x8xbf16>, vector<8x16xbf16>, vector<8x16xf32> -> vector<8x16xf32>
    %c0_67 = arith.constant 0 : index
    %c16 = arith.constant 16 : index
    %95 = vector.load %arg10[%c0_67, %c16] : memref<8x64xf32, #tpu.memory_space<vmem>>, vector<8x16xf32>
    tpu.vector_store %arg10[%c0_67, %c16], %94 {strides = array<i32>} : memref<8x64xf32, #tpu.memory_space<vmem>>, vector<8x16xf32>,
    %c2_68 = arith.constant 2 : index
    %c0_69 = arith.constant 0 : index
    %c0_70 = arith.constant 0 : index
    %96 = vector.load %arg11[%c2_68, %c0_69, %c0_70] : memref<4x8x8xf32, #tpu.memory_space<vmem>>, vector<1x8x8xf32>
    %97 = vector.shape_cast %96 : vector<1x8x8xf32> to vector<8x8xf32>
    %98 = arith.mulf %97, %81 : vector<8x8xf32>
    %99 = arith.truncf %98 : vector<8x8xf32> to vector<8x8xbf16>
    %100 = vector.extract_strided_slice %22 {offsets = [0, 32], sizes = [8, 16], strides = [1, 1]} : vector<8x64xbf16> to vector<8x16xbf16>
    %cst_71 = arith.constant dense<0.000000e+00> : vector<8x16xf32>
    %101 = tpu.matmul %99, %100, %cst_71 {dimension_numbers = #tpu.dot_dimension_numbers<[1], [0], [0], [1], [0, 0, 1, 1], [], []>} : vector<8x8xbf16>, vector<8x16xbf16>, vector<8x16xf32> -> vector<8x16xf32>
    %c0_72 = arith.constant 0 : index
    %c32 = arith.constant 32 : index
    %102 = vector.load %arg10[%c0_72, %c32] : memref<8x64xf32, #tpu.memory_space<vmem>>, vector<8x16xf32>
    tpu.vector_store %arg10[%c0_72, %c32], %101 {strides = array<i32>} : memref<8x64xf32, #tpu.memory_space<vmem>>, vector<8x16xf32>,
    %c3_73 = arith.constant 3 : index
    %c0_74 = arith.constant 0 : index
    %c0_75 = arith.constant 0 : index
    %103 = vector.load %arg11[%c3_73, %c0_74, %c0_75] : memref<4x8x8xf32, #tpu.memory_space<vmem>>, vector<1x8x8xf32>
    %104 = vector.shape_cast %103 : vector<1x8x8xf32> to vector<8x8xf32>
    %105 = arith.mulf %104, %81 : vector<8x8xf32>
    %106 = arith.truncf %105 : vector<8x8xf32> to vector<8x8xbf16>
    %107 = vector.extract_strided_slice %22 {offsets = [0, 48], sizes = [8, 16], strides = [1, 1]} : vector<8x64xbf16> to vector<8x16xbf16>
    %cst_76 = arith.constant dense<0.000000e+00> : vector<8x16xf32>
    %108 = tpu.matmul %106, %107, %cst_76 {dimension_numbers = #tpu.dot_dimension_numbers<[1], [0], [0], [1], [0, 0, 1, 1], [], []>} : vector<8x8xbf16>, vector<8x16xbf16>, vector<8x16xf32> -> vector<8x16xf32>
    %c0_77 = arith.constant 0 : index
    %c48 = arith.constant 48 : index
    %109 = vector.load %arg10[%c0_77, %c48] : memref<8x64xf32, #tpu.memory_space<vmem>>, vector<8x16xf32>
    tpu.vector_store %arg10[%c0_77, %c48], %108 {strides = array<i32>} : memref<8x64xf32, #tpu.memory_space<vmem>>, vector<8x16xf32>,
    return
  }
  func.func @transform_0(%arg0: i32) -> (i32, i32) {
    %c0_i32 = arith.constant 0 : i32
    %c0_i32_0 = arith.constant 0 : i32
    return %arg0, %c0_i32 : i32, i32
  }
  func.func @transform_1(%arg0: i32) -> (i32, i32) {
    %c0_i32 = arith.constant 0 : i32
    %c0_i32_0 = arith.constant 0 : i32
    %c0_i32_1 = arith.constant 0 : i32
    return %c0_i32, %c0_i32_0 : i32, i32
  }
  func.func @transform_2(%arg0: i32) -> (i32, i32) {
    %c0_i32 = arith.constant 0 : i32
    %c0_i32_0 = arith.constant 0 : i32
    %c0_i32_1 = arith.constant 0 : i32
    return %c0_i32, %c0_i32_0 : i32, i32
  }
  func.func @transform_3(%arg0: i32) -> (i32, i32) {
    %c0_i32 = arith.constant 0 : i32
    %c0_i32_0 = arith.constant 0 : i32
    %c0_i32_1 = arith.constant 0 : i32
    return %c0_i32, %c0_i32_0 : i32, i32
  }
  func.func @transform_4(%arg0: i32) -> (i32, i32) {
    %c0_i32 = arith.constant 0 : i32
    %c0_i32_0 = arith.constant 0 : i32
    %c0_i32_1 = arith.constant 0 : i32
    return %c0_i32, %c0_i32_0 : i32, i32
  }
  func.func @transform_5(%arg0: i32) -> (i32, i32) {
    %c0_i32 = arith.constant 0 : i32
    %c0_i32_0 = arith.constant 0 : i32
    %c0_i32_1 = arith.constant 0 : i32
    return %c0_i32, %c0_i32_0 : i32, i32
  }
  func.func @transform_6(%arg0: i32) -> (i32, i32) {
    %c0_i32 = arith.constant 0 : i32
    %c0_i32_0 = arith.constant 0 : i32
    %c0_i32_1 = arith.constant 0 : i32
    return %c0_i32, %c0_i32_0 : i32, i32
  }
  func.func @transform_7(%arg0: i32) -> (i32, i32) {
    %c0_i32 = arith.constant 0 : i32
    %c0_i32_0 = arith.constant 0 : i32
    %c0_i32_1 = arith.constant 0 : i32
    return %c0_i32, %c0_i32_0 : i32, i32
  }
  func.func @transform_8(%arg0: i32) -> (i32, i32) {
    %c0_i32 = arith.constant 0 : i32
    %c0_i32_0 = arith.constant 0 : i32
    %c0_i32_1 = arith.constant 0 : i32
    return %c0_i32, %c0_i32_0 : i32, i32
  }
  func.func @transform_9(%arg0: i32) -> (i32, i32) {
    %c0_i32 = arith.constant 0 : i32
    %c0_i32_0 = arith.constant 0 : i32
    return %arg0, %c0_i32 : i32, i32
  }
}

</mosaic_0001>

<bundles_post_ra>
// kernel: tpu_custom_call.1
= control target key start
LH: loop header
LB: loop body
LE: loop exit
PB: predicated region body
PF: predicated region fallthrough
CT: control target
= control target key end

     0   :  { %14 = vsyncpa [#allocation4], 0  ;;  %s1491_s0 = inlined_call_operand.hbm [shape: bf16[8,32], index: 0, kind: input, shape index: {}]   ;;  %s1492_s1 = inlined_call_operand.hbm [shape: bf16[8,32], index: 1, kind: input, shape index: {}]   ;;  %s1493_s2 = inlined_call_operand.hbm [shape: bf16[8,32], index: 2, kind: input, shape index: {}]   ;;  %s1494_s3 = inlined_call_operand.hbm [shape: bf16[32,32], index: 3, kind: input, shape index: {}]   ;;  %s1495_s4 = inlined_call_operand.hbm [shape: f32[1,32], index: 4, kind: input, shape index: {}]   ;;  %s1496_s5 = inlined_call_operand.hbm [shape: bf16[32,32], index: 5, kind: input, shape index: {}]   ;;  %s1497_s6 = inlined_call_operand.hbm [shape: f32[1,32], index: 6, kind: input, shape index: {}]   ;;  %s1498_s7 = inlined_call_operand.hbm [shape: bf16[32,64], index: 7, kind: input, shape index: {}]   ;;  %s1499_s8 = inlined_call_operand.hbm [shape: f32[1,64], index: 8, kind: input, shape index: {}]   ;;  %s1500_s9 = inlined_call_operand.hbm [shape: f32[8,64], index: 9, kind: output, shape index: {}]  }
   0x1   :  { %15 = vsyncpa [#allocation7], 0 }
   0x2   :  { %16 = vsyncpa [#allocation10], 0 }
   0x3   :  { %17 = vsyncpa [#allocation13], 0 }
   0x4   :  { %18 = vsyncpa [#allocation16], 0 }
   0x5   :  { %19 = vsyncpa [#allocation5], 0  ;;  %s1213_s30 = smov [#allocation6]   ;;  %s1214_s11 = smov [#allocation9]  }
   0x6   :  { %s36_s10 = sshll.u32 %s1213_s30, 4  ;;  %s55_s12 = sshll.u32 %s1214_s11, 4  ;;  %s37_s10 = int_to_ptr.vmem [resolvable:$true] %s36_s10  ;;  %s1285_s12 = int_to_ptr.vmem [resolvable:$true] %s55_s12 }
   0x7   :  { %s981_s15 = scalar_lea.hbm %s1492_s1, 64 }
   0x8   :  { %p982_p0 = scmp.ne.s32.totalorder %s1492_s1, %s981_s15  ;;  %p985_p1 = scmp.lt.u32.totalorder %s981_s15, %s1492_s1 }
   0xa   :  { %p987_p2 = pnand %p985_p1, %p982_p0 }
   0xc   :  { %990 = shalt.err (!%p987_p2)
}
   0xd   :  { %s991_s20 = scalar_lea.vmem %s37_s10, 64  ;;  %p996_p4 = scmp.lt.s32.totalorder %s37_s10, %s37_s10 }
   0xe   :  { %p992_p3 = scmp.ne.s32.totalorder %s37_s10, %s991_s20  ;;  %p997_p5 = scmp.lt.s32.totalorder %s991_s20, %s991_s20 }
  0x10   :  { %p998_p6 = por %p997_p5, %p996_p4 }
  0x12   :  { %p999_p7 = pnand %p998_p6, %p992_p3 }
  0x14   :  { %1002 = shalt.err (!%p999_p7)
}
  0x15   :  { %39 = dma.hbm_to_vmem [thread:$0]  %s1492_s1, 64, %s37_s10, [#allocation7]  }
  0x16   :  { %s1003_s25 = scalar_lea.hbm %s1494_s3, 256 }
  0x17   :  { %p1004_p8 = scmp.ne.s32.totalorder %s1494_s3, %s1003_s25  ;;  %p1007_p9 = scmp.lt.u32.totalorder %s1003_s25, %s1494_s3 }
  0x19   :  { %p1009_p10 = pnand %p1007_p9, %p1004_p8 }
  0x1b   :  { %1012 = shalt.err (!%p1009_p10)
}
  0x1c   :  { %s1013_s30 = scalar_lea.vmem %s1285_s12, 256  ;;  %p1018_p12 = scmp.lt.s32.totalorder %s1285_s12, %s1285_s12 }
  0x1d   :  { %p1014_p11 = scmp.ne.s32.totalorder %s1285_s12, %s1013_s30  ;;  %p1019_p13 = scmp.lt.s32.totalorder %s1013_s30, %s1013_s30 }
  0x1f   :  { %p1020_p0 = por %p1019_p13, %p1018_p12 }
  0x21   :  { %p1021_p1 = pnand %p1020_p0, %p1014_p11 }
  0x23   :  { %1024 = shalt.err (!%p1021_p1)
}
  0x24   :  { %s1215_s1 = smov 64   ;;  %s1216_s10 = smov 4  }
  0x25   :  { %61 = dma.hbm_to_vmem [thread:$0]  %s1494_s3, 256, %s1285_s12, [#allocation10], %s1215_s1, %s1215_s1, %s1216_s10  }
  0x26   :  { %s1217_s14 = smov [#allocation12]   ;;  %s1218_s16 = smov [#allocation15]  }
  0x27   :  { %s77_s15 = sshll.u32 %s1217_s14, 4  ;;  %s99_s17 = sshll.u32 %s1218_s16, 4  ;;  %s78_s15 = int_to_ptr.vmem [resolvable:$true] %s77_s15  ;;  %s1319_s17 = int_to_ptr.vmem [resolvable:$true] %s99_s17 }
  0x28   :  { %s1025_s20 = scalar_lea.hbm %s1496_s5, 256 }
  0x29   :  { %p1026_p2 = scmp.ne.s32.totalorder %s1496_s5, %s1025_s20  ;;  %p1029_p3 = scmp.lt.u32.totalorder %s1025_s20, %s1496_s5 }
  0x2b   :  { %p1031_p4 = pnand %p1029_p3, %p1026_p2 }
  0x2d   :  { %1034 = shalt.err (!%p1031_p4)
}
  0x2e   :  { %s1035_s3 = scalar_lea.vmem %s78_s15, 256  ;;  %p1040_p6 = scmp.lt.s32.totalorder %s78_s15, %s78_s15 }
  0x2f   :  { %p1036_p5 = scmp.ne.s32.totalorder %s78_s15, %s1035_s3  ;;  %p1041_p7 = scmp.lt.s32.totalorder %s1035_s3, %s1035_s3 }
  0x31   :  { %p1042_p8 = por %p1041_p7, %p1040_p6 }
  0x33   :  { %p1043_p9 = pnand %p1042_p8, %p1036_p5 }
  0x35   :  { %1046 = shalt.err (!%p1043_p9)
}
  0x36   :  { %83 = dma.hbm_to_vmem [thread:$0]  %s1496_s5, 256, %s78_s15, [#allocation13], %s1215_s1, %s1215_s1, %s1216_s10  }
  0x37   :  { %s1047_s28 = scalar_lea.hbm %s1498_s7, 256 }
  0x38   :  { %p1048_p10 = scmp.ne.s32.totalorder %s1498_s7, %s1047_s28  ;;  %p1051_p11 = scmp.lt.u32.totalorder %s1047_s28, %s1498_s7 }
  0x3a   :  { %p1053_p12 = pnand %p1051_p11, %p1048_p10 }
  0x3c   :  { %1056 = shalt.err (!%p1053_p12)
}
  0x3d   :  { %s1057_s14 = scalar_lea.vmem %s1319_s17, 256  ;;  %p1062_p0 = scmp.lt.s32.totalorder %s1319_s17, %s1319_s17 }
  0x3e   :  { %p1058_p13 = scmp.ne.s32.totalorder %s1319_s17, %s1057_s14  ;;  %p1063_p1 = scmp.lt.s32.totalorder %s1057_s14, %s1057_s14 }
  0x40   :  { %p1064_p2 = por %p1063_p1, %p1062_p0 }
  0x42   :  { %p1065_p3 = pnand %p1064_p2, %p1058_p13 }
  0x44   :  { %1068 = shalt.err (!%p1065_p3)
}
  0x45   :  { %105 = dma.hbm_to_vmem [thread:$0]  %s1498_s7, 256, %s1319_s17, [#allocation16], %s1215_s1, %s1215_s1, %s1216_s10  }
  0x46   :  { %s1219_s16 = smov [#allocation3]   ;;  %s1220_s19 = smov [#allocation8]  }
  0x47   :  { %s26_s18 = sshll.u32 %s1219_s16, 4  ;;  %s46_s20 = sshll.u32 %s1220_s19, 4  ;;  %s27_s18 = int_to_ptr.vmem [resolvable:$true] %s26_s18  ;;  %s47_s20 = int_to_ptr.vmem [resolvable:$true] %s46_s20 }
  0x48   :  { %s1069_s23 = scalar_lea.hbm %s1491_s0, 64 }
  0x49   :  { %p1070_p4 = scmp.ne.s32.totalorder %s1491_s0, %s1069_s23  ;;  %p1073_p5 = scmp.lt.u32.totalorder %s1069_s23, %s1491_s0 }
  0x4b   :  { %p1075_p6 = pnand %p1073_p5, %p1070_p4 }
  0x4d   :  { %1078 = shalt.err (!%p1075_p6)
}
  0x4e   :  { %s1079_s7 = scalar_lea.vmem %s27_s18, 64  ;;  %p1084_p8 = scmp.lt.s32.totalorder %s27_s18, %s27_s18 }
  0x4f   :  { %p1080_p7 = scmp.ne.s32.totalorder %s27_s18, %s1079_s7  ;;  %p1085_p9 = scmp.lt.s32.totalorder %s1079_s7, %s1079_s7 }
  0x51   :  { %p1086_p10 = por %p1085_p9, %p1084_p8 }
  0x53   :  { %p1087_p11 = pnand %p1086_p10, %p1080_p7 }
  0x55   :  { %1090 = shalt.err (!%p1087_p11)
}
  0x56   :  { %29 = dma.hbm_to_vmem [thread:$0]  %s1491_s0, 64, %s27_s18, [#allocation4]  }
  0x57   :  { %s1091_s27 = scalar_lea.hbm %s1493_s2, 64 }
  0x58   :  { %p1092_p12 = scmp.ne.s32.totalorder %s1493_s2, %s1091_s27  ;;  %p1095_p13 = scmp.lt.u32.totalorder %s1091_s27, %s1493_s2 }
  0x5a   :  { %p1097_p0 = pnand %p1095_p13, %p1092_p12 }
  0x5c   :  { %1100 = shalt.err (!%p1097_p0)
}
  0x5d   :  { %s1101_s13 = scalar_lea.vmem %s47_s20, 64  ;;  %p1106_p2 = scmp.lt.s32.totalorder %s47_s20, %s47_s20 }
  0x5e   :  { %p1102_p1 = scmp.ne.s32.totalorder %s47_s20, %s1101_s13  ;;  %p1107_p3 = scmp.lt.s32.totalorder %s1101_s13, %s1101_s13 }
  0x60   :  { %p1108_p4 = por %p1107_p3, %p1106_p2 }
  0x62   :  { %p1109_p5 = pnand %p1108_p4, %p1102_p1 }
  0x64   :  { %1112 = shalt.err (!%p1109_p5)
}
  0x65   :  { %49 = dma.hbm_to_vmem [thread:$0]  %s1493_s2, 64, %s47_s20, [#allocation7]  }
  0x66   :  { %s1221_s5 = smov [#allocation11]   ;;  %s1222_s16 = smov [#allocation14]  }
  0x67   :  { %s68_s15 = sshll.u32 %s1221_s5, 4  ;;  %s90_s18 = sshll.u32 %s1222_s16, 4  ;;  %s69_s15 = int_to_ptr.vmem [resolvable:$true] %s68_s15  ;;  %s91_s18 = int_to_ptr.vmem [resolvable:$true] %s90_s18 }
  0x68   :  { %s1113_s22 = scalar_lea.hbm %s1495_s4, 16 }
  0x69   :  { %p1114_p6 = scmp.ne.s32.totalorder %s1495_s4, %s1113_s22  ;;  %p1117_p7 = scmp.lt.u32.totalorder %s1113_s22, %s1495_s4 }
  0x6b   :  { %p1119_p8 = pnand %p1117_p7, %p1114_p6 }
  0x6d   :  { %1122 = shalt.err (!%p1119_p8)
}
  0x6e   :  { %s1123_s2 = scalar_lea.vmem %s69_s15, 16  ;;  %s1127_s20 = scalar_lea.vmem %s69_s15, 32 }
  0x6f   :  { %p1124_p9 = scmp.ne.s32.totalorder %s69_s15, %s1123_s2  ;;  %p1128_p10 = scmp.lt.s32.totalorder %s69_s15, %s69_s15 }
  0x70   :  { %p1129_p11 = scmp.lt.s32.totalorder %s1127_s20, %s1123_s2 }
  0x72   :  { %p1130_p12 = por %p1129_p11, %p1128_p10 }
  0x74   :  { %p1131_p13 = pnand %p1130_p12, %p1124_p9 }
  0x76   :  { %1134 = shalt.err (!%p1131_p13)
}
  0x77   :  { %71 = dma.hbm_to_vmem [thread:$0]  %s1495_s4, 16, %s69_s15, [#allocation10]  }
  0x78   :  { %s1135_s17 = scalar_lea.hbm %s1497_s6, 16 }
  0x79   :  { %p1136_p0 = scmp.ne.s32.totalorder %s1497_s6, %s1135_s17  ;;  %p1139_p1 = scmp.lt.u32.totalorder %s1135_s17, %s1497_s6 }
  0x7b   :  { %p1141_p2 = pnand %p1139_p1, %p1136_p0 }
  0x7d   :  { %1144 = shalt.err (!%p1141_p2)
}
  0x7e   :  { %s1145_s30 = scalar_lea.vmem %s91_s18, 16  ;;  %s1149_s11 = scalar_lea.vmem %s91_s18, 32 }
  0x7f   :  { %p1146_p3 = scmp.ne.s32.totalorder %s91_s18, %s1145_s30  ;;  %p1150_p4 = scmp.lt.s32.totalorder %s91_s18, %s91_s18 }
  0x80   :  { %p1151_p5 = scmp.lt.s32.totalorder %s1149_s11, %s1145_s30 }
  0x82   :  { %p1152_p6 = por %p1151_p5, %p1150_p4 }
  0x84   :  { %p1153_p7 = pnand %p1152_p6, %p1146_p3 }
  0x86   :  { %1156 = shalt.err (!%p1153_p7)
}
  0x87   :  { %93 = dma.hbm_to_vmem [thread:$0]  %s1497_s6, 16, %s91_s18, [#allocation13]  }
  0x88   :  { %s1223_s0 = smov [#allocation17]   ;;  %s1157_s16 = scalar_lea.hbm %s1499_s8, 16 }
  0x89   :  { %s112_s14 = sshll.u32 %s1223_s0, 4  ;;  %p1158_p8 = scmp.ne.s32.totalorder %s1499_s8, %s1157_s16  ;;  %s113_s14 = int_to_ptr.vmem [resolvable:$true] %s112_s14 }
  0x8a   :  { %p1161_p9 = scmp.lt.u32.totalorder %s1157_s16, %s1499_s8 }
  0x8c   :  { %p1163_p10 = pnand %p1161_p9, %p1158_p8 }
  0x8e   :  { %1166 = shalt.err (!%p1163_p10)
}
  0x8f   :  { %s1167_s24 = scalar_lea.vmem %s113_s14, 16  ;;  %s1171_s6 = scalar_lea.vmem %s113_s14, 32 }
  0x90   :  { %p1168_p11 = scmp.ne.s32.totalorder %s113_s14, %s1167_s24  ;;  %p1172_p12 = scmp.lt.s32.totalorder %s113_s14, %s113_s14 }
  0x91   :  { %p1173_p13 = scmp.lt.s32.totalorder %s1171_s6, %s1167_s24 }
  0x93   :  { %p1174_p0 = por %p1173_p13, %p1172_p12 }
  0x95   :  { %p1175_p1 = pnand %p1174_p0, %p1168_p11 }
  0x97   :  { %1178 = shalt.err (!%p1175_p1)
}
  0x98   :  { %115 = dma.hbm_to_vmem [thread:$0]  %s1499_s8, 16, %s113_s14, [#allocation16]  }
  0x99   :  { %1201 = dma.done.wait [#allocation4], 64  }
  0x9a   :  { %1202 = vsyncadd [#allocation4], 4294967232 }
  0x9b   :  { %1203 = dma.done.wait [#allocation7], 128  }
  0x9c   :  { %1204 = vsyncadd [#allocation7], 4294967168 }
  0x9d   :  { %1205 = dma.done.wait [#allocation10], 272  }
  0x9e   :  { %1206 = vsyncadd [#allocation10], 4294967024 }
  0x9f   :  { %1207 = dma.done.wait [#allocation13], 272  }
  0xa0   :  { %1208 = vsyncadd [#allocation13], 4294967024 }
  0xa1   :  { %1209 = dma.done.wait [#allocation16], 272  }
  0xa2   :  { %1210 = vsyncadd [#allocation16], 4294967024  ;;  %v1224_v0 = vmov 0.0   ;;  %vm1225_vm0 = vmmov 0   ;;  %v965_v1 = vld [vmem:[#allocation9] sm:$0xff]   ;;  %v966_v2 = vld [vmem:[#allocation12] sm:$0xff]  }
  0xa3   :  { %871 = vmatprep.subr.bf16.mxu0 %v1224_v0  ;;  %879 = vmatprep.subr.bf16.mxu1 %v1224_v0  ;;  %v967_v3 = vld [vmem:[#allocation9 + $0x8] sm:$0xff]   ;;  %v968_v4 = vld [vmem:[#allocation12 + $0x8] sm:$0xff]   ;;  %v144_v5 = vld [vmem:[#allocation3] sm:$0xf]  ;;  %vm168_vm1 = vcmask 261120   ;;  %vm350_vm2 = vcmask 64512  }
  0xa4   :  { %875 = vmatprep.mubr.msk.bf16.mxu0 %vm1225_vm0, %v1224_v0  ;;  %883 = vmatprep.mubr.msk.bf16.mxu1 %vm1225_vm0, %v1224_v0  ;;  %v212_v6 = vld [vmem:[#allocation6] sm:$0xf]  ;;  %v969_v7 = vld [vmem:[#allocation15] sm:$0xff]   ;;  %v970_v8 = vld [vmem:[#allocation15 + $0x8] sm:$0xff]   ;;  %s1226_s8 = smov 120   ;;  %s1227_s12 = smov 112  }
  0xa5   :  { %872 = vmatpush3.bf16.msra.mxu0 %v965_v1  ;;  %880 = vmatpush3.bf16.msra.mxu1 %v966_v2  ;;  %v279_v9 = vld [vmem:[#allocation8] sm:$0xf]  ;;  %v826_v10 = vld [vmem:[#allocation11] ss:$0 sm:$0xff]  ;;  %v830_v11 = vld [vmem:[#allocation14] ss:$0 sm:$0xff] }
  0xa6   :  { %873 = vmatprep.subr.bf16.mxu0 %v1224_v0  ;;  %881 = vmatprep.subr.bf16.mxu1 %v1224_v0  ;;  %s1228_s2 = smov 104   ;;  %v834_v26 = vld [vmem:[#allocation17] ss:$0 sm:$0xff]  ;;  %s1229_s20 = smov 96   ;;  %vm589_vm3 = vcmask 1043456   ;;  %vm633_vm4 = vcmask 130048  }
  0xa7   :  { %s1230_s25 = smov 80   ;;  %s1231_s7 = smov 16   ;;  %vm691_vm5 = vcmask 261248   ;;  %vm748_vm6 = vcmask 392448   ;;  %vm805_vm7 = vcmask 523648  }
  0xa8   :  { %s1232_s1 = smov 32   ;;  %s1233_s10 = smov 48  }
  0xa9   :  { %874 = vmatpush3.bf16.msra.mxu0 %v967_v3  ;;  %882 = vmatpush3.bf16.msra.mxu1 %v968_v4  ;;  %s1234_s17 = smov [#allocation18]  }
  0xaa   :  { %887 = vmatprep.subr.bf16.mxu0 %v1224_v0  ;;  %895 = vmatprep.subr.bf16.mxu1 %v1224_v0  ;;  %s813_s26 = sshll.u32 %s1234_s17, 4  ;;  %s814_s26 = int_to_ptr.vmem [resolvable:$true] %s813_s26 }
  0xab   :  { %s1179_s27 = scalar_lea.vmem %s814_s26, 128  ;;  %p1184_p3 = scmp.lt.s32.totalorder %s814_s26, %s814_s26 }
  0xac   :  { %876 = vmatmul.mubr.msk.bf16.vlgmr.msra.gmra.mrb[0].mxu0 %vm168_vm1, %v144_v5  ;;  %884 = vmatmul.mubr.msk.bf16.vlgmr.msra.gmra.mrb[0].mxu1 %vm168_vm1, %v212_v6  ;;  %p1180_p2 = scmp.ne.s32.totalorder %s814_s26, %s1179_s27  ;;  %p1185_p4 = scmp.lt.s32.totalorder %s1179_s27, %s1179_s27 }
  0xad   :  { %891 = vmatprep.mubr.msk.bf16.mxu0 %vm1225_vm0, %v1224_v0  ;;  %897 = vmatprep.mubr.msk.bf16.mxu1 %vm1225_vm0, %v1224_v0 }
  0xae   :  { %888 = vmatpush3.bf16.msra.mxu0 %v969_v7  ;;  %p1186_p5 = por %p1185_p4, %p1184_p3 }
  0xaf   :  { %889 = vmatprep.subr.bf16.mxu0 %v1224_v0 }
  0xb0   :  { %p1187_p6 = pnand %p1186_p5, %p1180_p2 }
  0xb2   :  { %890 = vmatpush3.bf16.msra.mxu0 %v970_v8 }
  0xb3   :  { %901 = vmatprep.subr.bf16.mxu0 %v1224_v0 }
  0xb5   :  { %892 = vmatmul.mubr.msk.bf16.vlgmr.msra.gmra.mrb[4].mxu0 %vm168_vm1, %v279_v9 }
  0xb6   :  { %903 = vmatprep.mubr.msk.bf16.mxu0 %vm1225_vm0, %v1224_v0 }
 0x17f   :  { %v206_v12 = vpop.f32.mrb[0].mxu0  ;;  %v273_v14 = vpop.f32.mrb[0].mxu1 }
 0x180   :  { %v207_v13 = vadd.f32 %v826_v10, %v206_v12  ;;  %v877_v15 = vpop.f32.mrb[1].mxu0  ;;  %v274_v16 = vadd.f32 %v830_v11, %v273_v14  ;;  %v885_v17 = vpop.f32.mrb[1].mxu1 }
 0x181   :  { %v209_v18 = vpop.f32.mrb[2].mxu0  ;;  %v276_v20 = vpop.f32.mrb[2].mxu1 }
 0x182   :  { %v346_v19 = vmul.f32 0.35355338, %v207_v13  ;;  %v878_v21 = vpop.f32.mrb[3].mxu0  ;;  %v348_v22 = vpack.c.bf16 %v274_v16, %v274_v16  ;;  %v886_v23 = vpop.f32.mrb[3].mxu1 }
 0x184   :  { %v347_v24 = vpack.c.bf16 %v346_v19, %v346_v19  ;;  %402 = vrot.lane.b32.xlu0 %v348_v22, %s1226_s8  ;;  %v355_v25 = vsel %vm350_vm2, %v348_v22, 0 }
 0x185   :  { %896 = vmatpush3.bf16.xpose.msra.mxu1 %v355_v25 }
 0x186   :  { %399 = vrot.lane.b32.xlu1 %v347_v24, %s1226_s8  ;;  %907 = vmatprep.subr.bf16.mxu1 %v1224_v0 }
 0x188   :  { %455 = vrot.lane.b32.xlu0 %v348_v22, %s1227_s12  ;;  %v340_v27 = vpop.f32.mrb[4].mxu0 }
 0x189   :  { %v341_v28 = vadd.f32 %v834_v26, %v340_v27  ;;  %v893_v29 = vpop.f32.mrb[5].mxu0 }
 0x18a   :  { %508 = vrot.lane.b32.xlu1 %v348_v22, %s1228_s2  ;;  %v343_v30 = vpop.f32.mrb[6].mxu0 }
 0x18b   :  { %v349_v31 = vpack.c.bf16 %v341_v28, %v341_v28  ;;  %v894_v32 = vpop.f32.mrb[7].mxu0 }
 0x18c   :  { %453 = vrot.lane.b32.xlu0 %v347_v24, %s1227_s12  ;;  %898 = vmatmul.mubr.msk.bf16.vlgmr.msra.gmra.mrb[4].mxu1 %vm350_vm2, %v347_v24 }
 0x18d   :  { %909 = vmatprep.mubr.msk.bf16.mxu1 %vm1225_vm0, %v1224_v0  ;;  %v591_v40 = vsel %vm589_vm3, %v349_v31, 0 }
 0x18e   :  { %506 = vrot.lane.b32.xlu1 %v347_v24, %s1228_s2 }
 0x190   :  { %639 = vrot.lane.b32.xlu0 %v349_v31, %s1227_s12 }
 0x192   :  { %696 = vrot.lane.b32.xlu1 %v349_v31, %s1229_s20 }
 0x194   :  { %753 = vrot.lane.b32.xlu0 %v349_v31, %s1230_s25 }
 0x1f6   :  { %v403_v33 = vpop.permute.xlu0 %402 }
 0x1f7   :  { %v408_v34 = vsel %vm350_vm2, %v403_v33, 0 }
 0x1f8   :  { %v400_v35 = vpop.permute.xlu1 %399  ;;  %902 = vmatpush3.bf16.xpose.msra.mxu0 %v408_v34 }
 0x1f9   :  { %913 = vmatprep.subr.bf16.mxu0 %v1224_v0 }
 0x1fa   :  { %v456_v36 = vpop.permute.xlu0 %455 }
 0x1fb   :  { %v461_v37 = vsel %vm350_vm2, %v456_v36, 0 }
 0x1fc   :  { %v509_v38 = vpop.permute.xlu1 %508  ;;  %908 = vmatpush3.bf16.xpose.msra.mxu1 %v461_v37 }
 0x1fd   :  { %919 = vmatprep.subr.bf16.mxu1 %v1224_v0  ;;  %v514_v39 = vsel %vm350_vm2, %v509_v38, 0 }
 0x1fe   :  { %v454_v41 = vpop.permute.xlu0 %453 }
 0x1ff   :  { %904 = vmatmul.mubr.msk.bf16.vlgmr.msra.gmra.mrb[8].mxu0 %vm350_vm2, %v400_v35 }
 0x200   :  { %914 = vmatpush3.bf16.xpose.msra.mxu0 %v514_v39  ;;  %915 = vmatprep.mubr.msk.bf16.mxu0 %vm1225_vm0, %v1224_v0  ;;  %v507_v42 = vpop.permute.xlu1 %506 }
 0x201   :  { %925 = vmatprep.subr.bf16.mxu0 %v1224_v0 }
 0x202   :  { %v640_v47 = vpop.permute.xlu0 %639 }
 0x203   :  { %910 = vmatmul.mubr.msk.bf16.vlgmr.msra.gmra.mrb[8].mxu1 %vm350_vm2, %v454_v41  ;;  %v645_v48 = vsel %vm589_vm3, %v640_v47, 0 }
 0x204   :  { %920 = vmatpush3.bf16.msra.mxu1 %v591_v40  ;;  %921 = vmatprep.mubr.msk.bf16.mxu1 %vm1225_vm0, %v1224_v0  ;;  %v697_v25 = vpop.permute.xlu1 %696 }
 0x205   :  { %931 = vmatprep.subr.bf16.mxu1 %v1224_v0  ;;  %v702_v29 = vsel %vm589_vm3, %v697_v25, 0 }
 0x206   :  { %v754_v26 = vpop.permute.xlu0 %753 }
 0x207   :  { %916 = vmatmul.mubr.msk.bf16.vlgmr.msra.gmra.mrb[12].mxu0 %vm350_vm2, %v507_v42  ;;  %v759_v30 = vsel %vm589_vm3, %v754_v26, 0 }
 0x208   :  { %927 = vmatprep.mubr.msk.bf16.mxu0 %vm1225_vm0, %v1224_v0  ;;  %926 = vmatpush3.bf16.msra.mxu0 %v645_v48 }
 0x209   :  { %937 = vmatprep.subr.bf16.mxu0 %v1224_v0 }
 0x25f   :  { %v391_v43 = vpop.f32.mrb[4].mxu1 }
 0x260   :  { %397 = vst.msk [vmem:[#allocation2] sm:$0xff] %vm350_vm2, %v391_v43  ;;  %v899_v44 = vpop.f32.mrb[5].mxu1 }
 0x261   :  { %v394_v45 = vpop.f32.mrb[6].mxu1 }
 0x262   :  { %v900_v46 = vpop.f32.mrb[7].mxu1 }
 0x267   :  { %v559_v62 = vld [vmem:[#allocation2] sm:$0xff] }
 0x2d2   :  { %v444_v49 = vpop.f32.mrb[8].mxu0 }
 0x2d3   :  { %451 = vst.msk [vmem:[#allocation2 + $0x8] sm:$0xff] %vm350_vm2, %v444_v49  ;;  %v452_v50 = vmax.f32 %v391_v43, %v444_v49  ;;  %v905_v51 = vpop.f32.mrb[9].mxu0 }
 0x2d4   :  { %v447_v52 = vpop.f32.mrb[10].mxu0 }
 0x2d5   :  { %v906_v53 = vpop.f32.mrb[11].mxu0 }
 0x2d6   :  { %v497_v54 = vpop.f32.mrb[8].mxu1 }
 0x2d7   :  { %504 = vst.msk [vmem:[#allocation2 + $0x10] sm:$0xff] %vm350_vm2, %v497_v54  ;;  %v505_v55 = vmax.f32 %v452_v50, %v497_v54  ;;  %v911_v56 = vpop.f32.mrb[9].mxu1 }
 0x2d8   :  { %v500_v57 = vpop.f32.mrb[10].mxu1 }
 0x2d9   :  { %v912_v58 = vpop.f32.mrb[11].mxu1 }
 0x2da   :  { %v550_v59 = vpop.f32.mrb[12].mxu0  ;;  %v564_v63 = vld [vmem:[#allocation2 + $0x8] sm:$0xff] }
 0x2db   :  { %557 = vst.msk [vmem:[#allocation2 + $0x18] sm:$0xff] %vm350_vm2, %v550_v59  ;;  %v558_v60 = vmax.f32 %v505_v55, %v550_v59  ;;  %v917_v61 = vpop.f32.mrb[13].mxu0 }
 0x2dc   :  { %v553_v1 = vpop.f32.mrb[14].mxu0 }
 0x2dd   :  { %v560_v2 = vsub.f32 %v559_v62, %v558_v60  ;;  %v565_v3 = vsub.f32 %v564_v63, %v558_v60  ;;  %v918_v4 = vpop.f32.mrb[15].mxu0 }
 0x2de   :  { %v570_v5 = vld [vmem:[#allocation2 + $0x10] sm:$0xff] }
 0x2df   :  { %v561_v6 = vmul.f32 1.442695, %v560_v2  ;;  %v566_v7 = vmul.f32 1.442695, %v565_v3  ;;  %v571_v8 = vsub.f32 %v570_v5, %v558_v60 }
 0x2e1   :  { %971 = vpow2.f32 %v561_v6  ;;  %v572_v9 = vmul.f32 1.442695, %v571_v8 }
 0x2e2   :  { %973 = vpow2.f32 %v566_v7  ;;  %v576_v10 = vld [vmem:[#allocation2 + $0x18] sm:$0xff] }
 0x2e3   :  { %975 = vpow2.f32 %v572_v9  ;;  %v577_v11 = vsub.f32 %v576_v10, %v558_v60 }
 0x2e5   :  { %v578_v12 = vmul.f32 1.442695, %v577_v11 }
 0x2e7   :  { %977 = vpow2.f32 %v578_v12 }
 0x2eb   :  { %v972_v13 = vpop.eup %971 }
 0x2ec   :  { %v974_v14 = vpop.eup %973  ;;  %563 = vst.msk [vmem:[#allocation2] sm:$0xff] %vm350_vm2, %v972_v13 }
 0x2ed   :  { %v976_v15 = vpop.eup %975  ;;  %568 = vst.msk [vmem:[#allocation2 + $0x8] sm:$0xff] %vm350_vm2, %v974_v14  ;;  %v569_v16 = vadd.f32 %v974_v14, %v972_v13 }
 0x2ee   :  { %574 = vst.msk [vmem:[#allocation2 + $0x10] sm:$0xff] %vm350_vm2, %v976_v15 }
 0x2ef   :  { %v575_v17 = vadd.f32 %v976_v15, %v569_v16 }
 0x2f1   :  { %v978_v18 = vpop.eup %977 }
 0x2f2   :  { %580 = vst.msk [vmem:[#allocation2 + $0x18] sm:$0xff] %vm350_vm2, %v978_v18  ;;  %v581_v19 = vadd.f32 %v978_v18, %v575_v17 }
 0x2f3   :  { %v583_v21 = vld [vmem:[#allocation2] sm:$0xff] }
 0x2f4   :  { %979 = vrcp.f32 %v581_v19  ;;  %v635_v22 = vld [vmem:[#allocation2 + $0x8] sm:$0xff] }
 0x2f5   :  { %v693_v31 = vld [vmem:[#allocation2 + $0x10] sm:$0xff] }
 0x2f9   :  { %v750_v32 = vld [vmem:[#allocation2 + $0x18] sm:$0xff] }
 0x2fe   :  { %v980_v20 = vpop.eup %979 }
 0x2ff   :  { %v584_v23 = vmul.f32 %v980_v20, %v583_v21  ;;  %v636_v24 = vmul.f32 %v980_v20, %v635_v22  ;;  %v694_v33 = vmul.f32 %v980_v20, %v693_v31  ;;  %v751_v34 = vmul.f32 %v980_v20, %v750_v32 }
 0x301   :  { %v585_v27 = vpack.c.bf16 %v584_v23, %v584_v23  ;;  %v637_v28 = vpack.c.bf16 %v636_v24, %v636_v24  ;;  %v695_v35 = vpack.c.bf16 %v694_v33, %v694_v33  ;;  %v752_v36 = vpack.c.bf16 %v751_v34, %v751_v34 }
 0x303   :  { %922 = vmatmul.mubr.msk.bf16.vlgmr.msra.gmra.mrb[12].mxu1 %vm350_vm2, %v585_v27  ;;  %928 = vmatmul.mubr.msk.bf16.vlgmr.msra.gmra.mrb[16].mxu0 %vm350_vm2, %v637_v28 }
 0x304   :  { %932 = vmatpush3.bf16.msra.mxu1 %v702_v29  ;;  %938 = vmatpush3.bf16.msra.mxu0 %v759_v30 }
 0x305   :  { %933 = vmatprep.mubr.msk.bf16.mxu1 %vm1225_vm0, %v1224_v0  ;;  %939 = vmatprep.mubr.msk.bf16.mxu0 %vm1225_vm0, %v1224_v0 }
 0x30b   :  { %934 = vmatmul.mubr.msk.bf16.vlgmr.msra.gmra.mrb[16].mxu1 %vm350_vm2, %v695_v35  ;;  %940 = vmatmul.mubr.msk.bf16.vlgmr.msra.gmra.mrb[20].mxu0 %vm350_vm2, %v752_v36 }
 0x3d6   :  { %v627_v37 = vpop.f32.mrb[12].mxu1  ;;  %v681_v38 = vpop.f32.mrb[16].mxu0 }
 0x3d7   :  { %634 = vst.msk [vmem:[#allocation18] sm:$0xff] %vm633_vm4, %v627_v37  ;;  %v923_v39 = vpop.f32.mrb[13].mxu1  ;;  %688 = vrot.lane.b32.xlu1 %v681_v38, %s1231_s7  ;;  %v929_v40 = vpop.f32.mrb[17].mxu0 }
 0x3d8   :  { %v630_v41 = vpop.f32.mrb[14].mxu1  ;;  %v684_v42 = vpop.f32.mrb[18].mxu0 }
 0x3d9   :  { %v924_v43 = vpop.f32.mrb[15].mxu1  ;;  %v930_v0 = vpop.f32.mrb[19].mxu0 }
 0x3de   :  { %v738_v44 = vpop.f32.mrb[16].mxu1  ;;  %v795_v45 = vpop.f32.mrb[20].mxu0 }
 0x3df   :  { %745 = vrot.lane.b32.xlu0 %v738_v44, %s1232_s1  ;;  %v935_v46 = vpop.f32.mrb[17].mxu1  ;;  %802 = vrot.lane.b32.xlu1 %v795_v45, %s1233_s10  ;;  %v941_v47 = vpop.f32.mrb[21].mxu0 }
 0x3e0   :  { %v741_v48 = vpop.f32.mrb[18].mxu1  ;;  %v798_v49 = vpop.f32.mrb[22].mxu0 }
 0x3e1   :  { %v936_v50 = vpop.f32.mrb[19].mxu1  ;;  %v942_v51 = vpop.f32.mrb[23].mxu0 }
 0x449   :  { %v689_v52 = vpop.permute.xlu1 %688 }
 0x44a   :  { %692 = vst.msk [vmem:[#allocation18] sm:$0xff] %vm691_vm5, %v689_v52 }
 0x451   :  { %v746_v53 = vpop.permute.xlu0 %745  ;;  %v803_v54 = vpop.permute.xlu1 %802 }
 0x452   :  { %749 = vst.msk [vmem:[#allocation18] sm:$0xff] %vm748_vm6, %v746_v53 }
 0x453   :  { %806 = vst.msk [vmem:[#allocation18] sm:$0xff] %vm805_vm7, %v803_v54 }
 0x454   :  { %1190 = shalt.err (!%p1187_p6)
}
 0x455   :  { %s1191_s30 = scalar_lea.hbm %s1500_s9, 128 }
 0x456   :  { %p1192_p7 = scmp.ne.s32.totalorder %s1500_s9, %s1191_s30  ;;  %p1195_p8 = scmp.lt.u32.totalorder %s1191_s30, %s1500_s9 }
 0x458   :  { %p1197_p9 = pnand %p1195_p8, %p1192_p7 }
 0x45a   :  { %1200 = shalt.err (!%p1197_p9)
}
 0x45b   :  { %816 = dma.vmem_to_hbm [thread:$0]  %s814_s26, 128, %s1500_s9, [#allocation5]  }
 0x45c   :  { %1211 = dma.done.wait [#allocation5], 128  }
 0x45d   :  { %1212 = vsyncadd [#allocation5], 4294967168 }
 0x45e   :  { %820 = vsyncpa [#allocation4], 1 }
 0x45f   :  { %821 = vsyncpa [#allocation7], 1 }
 0x460   :  { %822 = vsyncpa [#allocation10], 1 }
 0x461   :  { %823 = vsyncpa [#allocation13], 1 }
 0x462   :  { %824 = vsyncpa [#allocation16], 1 }
 0x463   :  { %825 = vsyncpa [#allocation5], 1 }

</bundles_post_ra>
